<compile_context>
chip_gen: v5e
topology: v5e:2x2
jax: 0.10.0
libtpu: 0.0.40
codegen_flags: <defaults>
</compile_context>

<pallas_src>
import functools

import jax
import jax.numpy as jnp
from jax.experimental import pallas as pl
from jax.experimental.pallas import tpu as pltpu

NEG_SLOPE = 0.01  # nn.LeakyReLU default


def _leaky(x):
    return jnp.where(x > 0, x, NEG_SLOPE * x)


# ---------------------------------------------------------------------------
# Fused kernel: BN-folded 1x1 conv + LeakyReLU + 3x3 depthwise + bias + LeakyReLU
# ---------------------------------------------------------------------------
def _ssconv_fused_kernel(x_ref, w_ref, b0_ref, mw_ref, b1_ref, o_ref, buf_ref,
                         *, W, NHW):
    # x_ref:  (Cin, NHW)        input, lane-dense over batch*H*W
    # w_ref:  (Cout, Cin)       BN-folded pointwise weight
    # b0_ref: (Cout, 1)         BN-folded pointwise bias
    # mw_ref: (9, Cout, NHW)    per-tap depthwise weight * boundary mask
    # b1_ref: (Cout, 1)         depthwise bias
    # o_ref:  (Cout, NHW)       output
    # buf_ref:(Cout, NHW+2*(W+1)) zero-padded scratch for the intermediate
    Cin = x_ref.shape[0]
    Cout = o_ref.shape[0]
    PAD = W + 1

    # --- stage 1: BN-folded pointwise conv as a VPU MAC over tiny Cin ---
    x = x_ref[...]                                         # (Cin, NHW) f32
    acc = jnp.zeros((Cout, NHW), jnp.float32)
    for i in range(Cin):                                   # static unroll
        acc = acc + w_ref[:, i:i + 1] * x[i:i + 1, :]      # (Cout,1)*(1,NHW)
    mid = _leaky(acc + b0_ref[...])                        # (Cout, NHW), VMEM only

    # --- stage 2: 3x3 depthwise (padding=1) via zero-padded lane slices ---
    # Write the intermediate into a scratch plane with W+1 zero lanes on each
    # side; every tap is then a static lane slice.  All boundary effects
    # (row edges, image edges within the flattened batch axis, and the zero
    # margins themselves) are handled by the precomputed masked tap weights.
    buf_ref[...] = jnp.zeros(buf_ref.shape, jnp.float32)
    buf_ref[:, pl.ds(PAD, NHW)] = mid

    out = jnp.zeros((Cout, NHW), jnp.float32)
    t = 0
    for dh in (-1, 0, 1):                                  # static unrolled taps
        for dw in (-1, 0, 1):
            off = dh * W + dw                              # flat tap offset
            tap = buf_ref[:, pl.ds(PAD + off, NHW)]        # tap[p] = mid[p+off]
            out = out + tap * mw_ref[t]                    # masked weight plane
            t += 1
    o_ref[...] = _leaky(out + b1_ref[...]).astype(o_ref.dtype)


# ---------------------------------------------------------------------------
# Wrapper
# ---------------------------------------------------------------------------
def ssconv_forward(x_nchw, params, eps=1e-5):
    """x_nchw: (N, Cin, H, W) float32. Returns (N, Cout, H, W)."""
    N, Cin, H, W = x_nchw.shape
    pw_w = params["pw_w"]          # (Cout, Cin)   point_conv weight[:, :, 0, 0]
    dw_w = params["dw_w"]          # (Cout, 3, 3)  depth_conv weight[:, 0]
    dw_b = params["dw_b"]          # (Cout,)
    gamma = params["bn_gamma"]     # (Cin,)
    beta = params["bn_beta"]       # (Cin,)
    Cout = pw_w.shape[0]
    HW = H * W
    NHW = N * HW                   # 512 here: multiple of 128 -> unmasked stores

    x32 = x_nchw.astype(jnp.float32)

    # --- BatchNorm2d batch stats (two-pass: avoids catastrophic cancellation) ---
    mean = jnp.mean(x32, axis=(0, 2, 3))
    var = jnp.mean(jnp.square(x32 - mean[None, :, None, None]), axis=(0, 2, 3))
    scale = gamma / jnp.sqrt(var + eps)
    shift = beta - mean * scale

    # --- fold BN into the pointwise conv ---
    wfold = (pw_w * scale[None, :]).astype(jnp.float32)           # (Cout, Cin)
    bfold = (pw_w @ shift).reshape(Cout, 1).astype(jnp.float32)   # (Cout, 1)

    # --- precompute per-tap masked depthwise weight planes (hoisted VALU work) ---
    col = jnp.arange(NHW)
    h_idx = (col % HW) // W
    w_idx = col % W
    masks = []
    for dh in (-1, 0, 1):
        for dw in (-1, 0, 1):
            valid = ((h_idx + dh >= 0) & (h_idx + dh < H)
                     & (w_idx + dw >= 0) & (w_idx + dw < W))
            masks.append(valid)
    mask_f32 = jnp.stack(masks, axis=0).astype(jnp.float32)        # (9, NHW)
    k9 = dw_w.reshape(Cout, 9).astype(jnp.float32)                 # tap t = (dh+1)*3+(dw+1)
    mw = k9.T[:, :, None] * mask_f32[:, None, :]                   # (9, Cout, NHW) ~144 KiB

    b1 = dw_b.reshape(Cout, 1).astype(jnp.float32)

    # NCHW -> (Cin, N*H*W): small wrapper transpose to present a lane-dense slab.
    x_flat = jnp.transpose(x32, (1, 0, 2, 3)).reshape(Cin, NHW)

    kernel = functools.partial(_ssconv_fused_kernel, W=W, NHW=NHW)
    out_flat = pl.pallas_call(
        kernel,
        out_shape=jax.ShapeDtypeStruct((Cout, NHW), jnp.float32),
        grid_spec=pltpu.PrefetchScalarGridSpec(
            num_scalar_prefetch=0,
            grid=(1,),                         # whole batch in one step
            in_specs=[
                pl.BlockSpec((Cin, NHW), lambda i: (0, 0)),
                pl.BlockSpec((Cout, Cin), lambda i: (0, 0)),
                pl.BlockSpec((Cout, 1), lambda i: (0, 0)),
                pl.BlockSpec((9, Cout, NHW), lambda i: (0, 0, 0)),
                pl.BlockSpec((Cout, 1), lambda i: (0, 0)),
            ],
            out_specs=pl.BlockSpec((Cout, NHW), lambda i: (0, 0)),
            scratch_shapes=[
                pltpu.VMEM((Cout, NHW + 2 * (W + 1)), jnp.float32),
            ],
        ),
        compiler_params=pltpu.CompilerParams(
            dimension_semantics=("arbitrary",)),
    )(x_flat, wfold, bfold, mw, b1)

    # (Cout, N*H*W) -> NCHW.
    return out_flat.reshape(Cout, N, H, W).transpose(1, 0, 2, 3)


# ---------------------------------------------------------------------------
# Pure-JAX reference (for correctness sanity check)
# ---------------------------------------------------------------------------
def ssconv_reference(x_nchw, params, eps=1e-5):
    pw_w, dw_w, dw_b = params["pw_w"], params["dw_w"], params["dw_b"]
    gamma, beta = params["bn_gamma"], params["bn_beta"]
    mean = jnp.mean(x_nchw, axis=(0, 2, 3))
    var = jnp.mean((x_nchw - mean[None, :, None, None]) ** 2, axis=(0, 2, 3))
    xn = (x_nchw - mean[None, :, None, None]) / jnp.sqrt(var + eps)[None, :, None, None]
    xn = xn * gamma[None, :, None, None] + beta[None, :, None, None]
    # 1x1 pointwise conv (cross-correlation == plain channel matmul)
    y = jnp.einsum("nihw,oi->nohw", xn, pw_w)
    y = jnp.where(y > 0, y, NEG_SLOPE * y)
    # depthwise 3x3, padding 1 (cross-correlation, PyTorch convention)
    ypad = jnp.pad(y, ((0, 0), (0, 0), (1, 1), (1, 1)))
    H, W = y.shape[2], y.shape[3]
    out = jnp.zeros_like(y)
    for i in range(3):
        for j in range(3):
            out = out + ypad[:, :, i:i + H, j:j + W] * dw_w[None, :, i, j, None, None]
    out = out + dw_b[None, :, None, None]
    return jnp.where(out > 0, out, NEG_SLOPE * out)


if __name__ == "__main__":
    # Small shapes consistent with the module: NCHW input, in_ch=4, out_ch=8.
    N, Cin, Cout, H, W = 2, 4, 8, 16, 16
    key = jax.random.PRNGKey(0)
    kx, k1, k2, k3 = jax.random.split(key, 4)

    x = jax.random.normal(kx, (N, Cin, H, W), dtype=jnp.float32)

    params = {
        # point_conv: Conv2d(in_ch, out_ch, 1, bias=False) -> weight (Cout, Cin, 1, 1)
        "pw_w": 0.2 * jax.random.normal(k1, (Cout, Cin), dtype=jnp.float32),
        # depth_conv: Conv2d(out_ch, out_ch, 3, groups=out_ch) -> weight (Cout, 1, 3, 3)
        "dw_w": 0.2 * jax.random.normal(k2, (Cout, 3, 3), dtype=jnp.float32),
        "dw_b": 0.1 * jax.random.normal(k3, (Cout,), dtype=jnp.float32),
        # BatchNorm2d default init
        "bn_gamma": jnp.ones((Cin,), dtype=jnp.float32),
        "bn_beta": jnp.zeros((Cin,), dtype=jnp.float32),
    }

    # TODO(synk): BatchNorm2d running-stat buffer updates (a training-mode side
    # effect) are not reproduced; the forward math uses batch stats, matching
    # a freshly-constructed module in training mode.
    fwd = jax.jit(ssconv_forward)  # keeps BN stats + folding in one fused XLA pass
    out = jax.block_until_ready(fwd(x, params))
    ref = jax.block_until_ready(ssconv_reference(x, params))

    assert out.shape == (N, Cout, H, W), out.shape
    assert jnp.allclose(out, ref, atol=1e-4, rtol=1e-4), float(
        jnp.max(jnp.abs(out - ref)))

    print("KERNEL_OK")
</pallas_src>

<mosaic_0001>
module attributes {stable_mosaic.version = 11 : i64} {
  func.func @_ssconv_fused_kernel(%arg0: i32, %arg1: memref<4x512xf32, #tpu.memory_space<vmem>>, %arg2: memref<8x4xf32, #tpu.memory_space<vmem>>, %arg3: memref<8x1xf32, #tpu.memory_space<vmem>>, %arg4: memref<9x8x512xf32, #tpu.memory_space<vmem>>, %arg5: memref<8x1xf32, #tpu.memory_space<vmem>>, %arg6: memref<8x512xf32, #tpu.memory_space<vmem>>, %arg7: memref<8x546xf32, #tpu.memory_space<vmem>>) attributes {dimension_semantics = [#tpu.dimension_semantics<arbitrary>], iteration_bounds = array<i64: 1>, scalar_prefetch = 0 : i64, scratch_operands = 1 : i64, tpu.core_type = #tpu.core_type<tc>, window_params = [{pipeline_mode = #tpu.pipeline_mode<synchronous>, transform_indices = @transform_0, window_bounds = array<i64: 4, 512>}, {pipeline_mode = #tpu.pipeline_mode<synchronous>, transform_indices = @transform_1, window_bounds = array<i64: 8, 4>}, {pipeline_mode = #tpu.pipeline_mode<synchronous>, transform_indices = @transform_2, window_bounds = array<i64: 8, 1>}, {pipeline_mode = #tpu.pipeline_mode<synchronous>, transform_indices = @transform_3, window_bounds = array<i64: 9, 8, 512>}, {pipeline_mode = #tpu.pipeline_mode<synchronous>, transform_indices = @transform_4, window_bounds = array<i64: 8, 1>}, {pipeline_mode = #tpu.pipeline_mode<synchronous>, transform_indices = @transform_5, window_bounds = array<i64: 8, 512>}]} {
    %c0 = arith.constant 0 : index
    %c0_0 = arith.constant 0 : index
    %0 = vector.load %arg1[%c0, %c0_0] : memref<4x512xf32, #tpu.memory_space<vmem>>, vector<4x512xf32>
    %cst = arith.constant 0.000000e+00 : f32
    %1 = vector.broadcast %cst : f32 to vector<8x512xf32>
    %c0_1 = arith.constant 0 : index
    %c0_2 = arith.constant 0 : index
    %2 = vector.load %arg2[%c0_1, %c0_2] : memref<8x4xf32, #tpu.memory_space<vmem>>, vector<8x1xf32>
    %3 = vector.extract_strided_slice %0 {offsets = [0, 0], sizes = [1, 512], strides = [1, 1]} : vector<4x512xf32> to vector<1x512xf32>
    %4 = vector.broadcast %2 : vector<8x1xf32> to vector<8x512xf32>
    %5 = vector.broadcast %3 : vector<1x512xf32> to vector<8x512xf32>
    %6 = arith.mulf %4, %5 : vector<8x512xf32>
    %7 = arith.addf %1, %6 : vector<8x512xf32>
    %c0_3 = arith.constant 0 : index
    %c1 = arith.constant 1 : index
    %8 = vector.load %arg2[%c0_3, %c1] : memref<8x4xf32, #tpu.memory_space<vmem>>, vector<8x1xf32>
    %9 = vector.extract_strided_slice %0 {offsets = [1, 0], sizes = [1, 512], strides = [1, 1]} : vector<4x512xf32> to vector<1x512xf32>
    %10 = vector.broadcast %8 : vector<8x1xf32> to vector<8x512xf32>
    %11 = vector.broadcast %9 : vector<1x512xf32> to vector<8x512xf32>
    %12 = arith.mulf %10, %11 : vector<8x512xf32>
    %13 = arith.addf %7, %12 : vector<8x512xf32>
    %c0_4 = arith.constant 0 : index
    %c2 = arith.constant 2 : index
    %14 = vector.load %arg2[%c0_4, %c2] : memref<8x4xf32, #tpu.memory_space<vmem>>, vector<8x1xf32>
    %15 = vector.extract_strided_slice %0 {offsets = [2, 0], sizes = [1, 512], strides = [1, 1]} : vector<4x512xf32> to vector<1x512xf32>
    %16 = vector.broadcast %14 : vector<8x1xf32> to vector<8x512xf32>
    %17 = vector.broadcast %15 : vector<1x512xf32> to vector<8x512xf32>
    %18 = arith.mulf %16, %17 : vector<8x512xf32>
    %19 = arith.addf %13, %18 : vector<8x512xf32>
    %c0_5 = arith.constant 0 : index
    %c3 = arith.constant 3 : index
    %20 = vector.load %arg2[%c0_5, %c3] : memref<8x4xf32, #tpu.memory_space<vmem>>, vector<8x1xf32>
    %21 = vector.extract_strided_slice %0 {offsets = [3, 0], sizes = [1, 512], strides = [1, 1]} : vector<4x512xf32> to vector<1x512xf32>
    %22 = vector.broadcast %20 : vector<8x1xf32> to vector<8x512xf32>
    %23 = vector.broadcast %21 : vector<1x512xf32> to vector<8x512xf32>
    %24 = arith.mulf %22, %23 : vector<8x512xf32>
    %25 = arith.addf %19, %24 : vector<8x512xf32>
    %c0_6 = arith.constant 0 : index
    %c0_7 = arith.constant 0 : index
    %26 = vector.load %arg3[%c0_6, %c0_7] : memref<8x1xf32, #tpu.memory_space<vmem>>, vector<8x1xf32>
    %27 = vector.broadcast %26 : vector<8x1xf32> to vector<8x512xf32>
    %28 = arith.addf %25, %27 : vector<8x512xf32>
    %cst_8 = arith.constant 0.000000e+00 : f32
    %29 = vector.broadcast %cst_8 : f32 to vector<8x512xf32>
    %30 = arith.cmpf ogt, %28, %29 : vector<8x512xf32>
    %cst_9 = arith.constant 0.00999999977 : f32
    %31 = vector.broadcast %cst_9 : f32 to vector<8x512xf32>
    %32 = arith.mulf %31, %28 : vector<8x512xf32>
    %33 = arith.select %30, %28, %32 : vector<8x512xi1>, vector<8x512xf32>
    %cst_10 = arith.constant 0.000000e+00 : f32
    %34 = vector.broadcast %cst_10 : f32 to vector<8x546xf32>
    %c0_11 = arith.constant 0 : index
    %c0_12 = arith.constant 0 : index
    %35 = vector.load %arg7[%c0_11, %c0_12] : memref<8x546xf32, #tpu.memory_space<vmem>>, vector<8x546xf32>
    tpu.vector_store %arg7[%c0_11, %c0_12], %34 {strides = array<i32>} : memref<8x546xf32, #tpu.memory_space<vmem>>, vector<8x546xf32>,
    %c0_13 = arith.constant 0 : index
    %c17 = arith.constant 17 : index
    %36 = vector.load %arg7[%c0_13, %c17] : memref<8x546xf32, #tpu.memory_space<vmem>>, vector<8x512xf32>
    tpu.vector_store %arg7[%c0_13, %c17], %33 {strides = array<i32>} : memref<8x546xf32, #tpu.memory_space<vmem>>, vector<8x512xf32>,
    %cst_14 = arith.constant 0.000000e+00 : f32
    %37 = vector.broadcast %cst_14 : f32 to vector<8x512xf32>
    %c0_15 = arith.constant 0 : index
    %c0_16 = arith.constant 0 : index
    %38 = vector.load %arg7[%c0_15, %c0_16] : memref<8x546xf32, #tpu.memory_space<vmem>>, vector<8x512xf32>
    %c0_17 = arith.constant 0 : index
    %c0_18 = arith.constant 0 : index
    %c0_19 = arith.constant 0 : index
    %39 = vector.load %arg4[%c0_17, %c0_18, %c0_19] : memref<9x8x512xf32, #tpu.memory_space<vmem>>, vector<1x8x512xf32>
    %40 = vector.shape_cast %39 : vector<1x8x512xf32> to vector<8x512xf32>
    %41 = arith.mulf %38, %40 : vector<8x512xf32>
    %42 = arith.addf %37, %41 : vector<8x512xf32>
    %c0_20 = arith.constant 0 : index
    %c1_21 = arith.constant 1 : index
    %43 = vector.load %arg7[%c0_20, %c1_21] : memref<8x546xf32, #tpu.memory_space<vmem>>, vector<8x512xf32>
    %c1_22 = arith.constant 1 : index
    %c0_23 = arith.constant 0 : index
    %c0_24 = arith.constant 0 : index
    %44 = vector.load %arg4[%c1_22, %c0_23, %c0_24] : memref<9x8x512xf32, #tpu.memory_space<vmem>>, vector<1x8x512xf32>
    %45 = vector.shape_cast %44 : vector<1x8x512xf32> to vector<8x512xf32>
    %46 = arith.mulf %43, %45 : vector<8x512xf32>
    %47 = arith.addf %42, %46 : vector<8x512xf32>
    %c0_25 = arith.constant 0 : index
    %c2_26 = arith.constant 2 : index
    %48 = vector.load %arg7[%c0_25, %c2_26] : memref<8x546xf32, #tpu.memory_space<vmem>>, vector<8x512xf32>
    %c2_27 = arith.constant 2 : index
    %c0_28 = arith.constant 0 : index
    %c0_29 = arith.constant 0 : index
    %49 = vector.load %arg4[%c2_27, %c0_28, %c0_29] : memref<9x8x512xf32, #tpu.memory_space<vmem>>, vector<1x8x512xf32>
    %50 = vector.shape_cast %49 : vector<1x8x512xf32> to vector<8x512xf32>
    %51 = arith.mulf %48, %50 : vector<8x512xf32>
    %52 = arith.addf %47, %51 : vector<8x512xf32>
    %c0_30 = arith.constant 0 : index
    %c16 = arith.constant 16 : index
    %53 = vector.load %arg7[%c0_30, %c16] : memref<8x546xf32, #tpu.memory_space<vmem>>, vector<8x512xf32>
    %c3_31 = arith.constant 3 : index
    %c0_32 = arith.constant 0 : index
    %c0_33 = arith.constant 0 : index
    %54 = vector.load %arg4[%c3_31, %c0_32, %c0_33] : memref<9x8x512xf32, #tpu.memory_space<vmem>>, vector<1x8x512xf32>
    %55 = vector.shape_cast %54 : vector<1x8x512xf32> to vector<8x512xf32>
    %56 = arith.mulf %53, %55 : vector<8x512xf32>
    %57 = arith.addf %52, %56 : vector<8x512xf32>
    %c0_34 = arith.constant 0 : index
    %c17_35 = arith.constant 17 : index
    %58 = vector.load %arg7[%c0_34, %c17_35] : memref<8x546xf32, #tpu.memory_space<vmem>>, vector<8x512xf32>
    %c4 = arith.constant 4 : index
    %c0_36 = arith.constant 0 : index
    %c0_37 = arith.constant 0 : index
    %59 = vector.load %arg4[%c4, %c0_36, %c0_37] : memref<9x8x512xf32, #tpu.memory_space<vmem>>, vector<1x8x512xf32>
    %60 = vector.shape_cast %59 : vector<1x8x512xf32> to vector<8x512xf32>
    %61 = arith.mulf %58, %60 : vector<8x512xf32>
    %62 = arith.addf %57, %61 : vector<8x512xf32>
    %c0_38 = arith.constant 0 : index
    %c18 = arith.constant 18 : index
    %63 = vector.load %arg7[%c0_38, %c18] : memref<8x546xf32, #tpu.memory_space<vmem>>, vector<8x512xf32>
    %c5 = arith.constant 5 : index
    %c0_39 = arith.constant 0 : index
    %c0_40 = arith.constant 0 : index
    %64 = vector.load %arg4[%c5, %c0_39, %c0_40] : memref<9x8x512xf32, #tpu.memory_space<vmem>>, vector<1x8x512xf32>
    %65 = vector.shape_cast %64 : vector<1x8x512xf32> to vector<8x512xf32>
    %66 = arith.mulf %63, %65 : vector<8x512xf32>
    %67 = arith.addf %62, %66 : vector<8x512xf32>
    %c0_41 = arith.constant 0 : index
    %c32 = arith.constant 32 : index
    %68 = vector.load %arg7[%c0_41, %c32] : memref<8x546xf32, #tpu.memory_space<vmem>>, vector<8x512xf32>
    %c6 = arith.constant 6 : index
    %c0_42 = arith.constant 0 : index
    %c0_43 = arith.constant 0 : index
    %69 = vector.load %arg4[%c6, %c0_42, %c0_43] : memref<9x8x512xf32, #tpu.memory_space<vmem>>, vector<1x8x512xf32>
    %70 = vector.shape_cast %69 : vector<1x8x512xf32> to vector<8x512xf32>
    %71 = arith.mulf %68, %70 : vector<8x512xf32>
    %72 = arith.addf %67, %71 : vector<8x512xf32>
    %c0_44 = arith.constant 0 : index
    %c33 = arith.constant 33 : index
    %73 = vector.load %arg7[%c0_44, %c33] : memref<8x546xf32, #tpu.memory_space<vmem>>, vector<8x512xf32>
    %c7 = arith.constant 7 : index
    %c0_45 = arith.constant 0 : index
    %c0_46 = arith.constant 0 : index
    %74 = vector.load %arg4[%c7, %c0_45, %c0_46] : memref<9x8x512xf32, #tpu.memory_space<vmem>>, vector<1x8x512xf32>
    %75 = vector.shape_cast %74 : vector<1x8x512xf32> to vector<8x512xf32>
    %76 = arith.mulf %73, %75 : vector<8x512xf32>
    %77 = arith.addf %72, %76 : vector<8x512xf32>
    %c0_47 = arith.constant 0 : index
    %c34 = arith.constant 34 : index
    %78 = vector.load %arg7[%c0_47, %c34] : memref<8x546xf32, #tpu.memory_space<vmem>>, vector<8x512xf32>
    %c8 = arith.constant 8 : index
    %c0_48 = arith.constant 0 : index
    %c0_49 = arith.constant 0 : index
    %79 = vector.load %arg4[%c8, %c0_48, %c0_49] : memref<9x8x512xf32, #tpu.memory_space<vmem>>, vector<1x8x512xf32>
    %80 = vector.shape_cast %79 : vector<1x8x512xf32> to vector<8x512xf32>
    %81 = arith.mulf %78, %80 : vector<8x512xf32>
    %82 = arith.addf %77, %81 : vector<8x512xf32>
    %c0_50 = arith.constant 0 : index
    %c0_51 = arith.constant 0 : index
    %83 = vector.load %arg5[%c0_50, %c0_51] : memref<8x1xf32, #tpu.memory_space<vmem>>, vector<8x1xf32>
    %84 = vector.broadcast %83 : vector<8x1xf32> to vector<8x512xf32>
    %85 = arith.addf %82, %84 : vector<8x512xf32>
    %cst_52 = arith.constant 0.000000e+00 : f32
    %86 = vector.broadcast %cst_52 : f32 to vector<8x512xf32>
    %87 = arith.cmpf ogt, %85, %86 : vector<8x512xf32>
    %cst_53 = arith.constant 0.00999999977 : f32
    %88 = vector.broadcast %cst_53 : f32 to vector<8x512xf32>
    %89 = arith.mulf %88, %85 : vector<8x512xf32>
    %90 = arith.select %87, %85, %89 : vector<8x512xi1>, vector<8x512xf32>
    %c0_54 = arith.constant 0 : index
    %c0_55 = arith.constant 0 : index
    %91 = vector.load %arg6[%c0_54, %c0_55] : memref<8x512xf32, #tpu.memory_space<vmem>>, vector<8x512xf32>
    tpu.vector_store %arg6[%c0_54, %c0_55], %90 {strides = array<i32>} : memref<8x512xf32, #tpu.memory_space<vmem>>, vector<8x512xf32>,
    return
  }
  func.func @transform_0(%arg0: i32) -> (i32, i32) {
    %c0_i32 = arith.constant 0 : i32
    %c0_i32_0 = arith.constant 0 : i32
    %c0_i32_1 = arith.constant 0 : i32
    return %c0_i32, %c0_i32_0 : i32, i32
  }
  func.func @transform_1(%arg0: i32) -> (i32, i32) {
    %c0_i32 = arith.constant 0 : i32
    %c0_i32_0 = arith.constant 0 : i32
    %c0_i32_1 = arith.constant 0 : i32
    return %c0_i32, %c0_i32_0 : i32, i32
  }
  func.func @transform_2(%arg0: i32) -> (i32, i32) {
    %c0_i32 = arith.constant 0 : i32
    %c0_i32_0 = arith.constant 0 : i32
    %c0_i32_1 = arith.constant 0 : i32
    return %c0_i32, %c0_i32_0 : i32, i32
  }
  func.func @transform_3(%arg0: i32) -> (i32, i32, i32) {
    %c0_i32 = arith.constant 0 : i32
    %c0_i32_0 = arith.constant 0 : i32
    %c0_i32_1 = arith.constant 0 : i32
    %c0_i32_2 = arith.constant 0 : i32
    return %c0_i32, %c0_i32_0, %c0_i32_1 : i32, i32, i32
  }
  func.func @transform_4(%arg0: i32) -> (i32, i32) {
    %c0_i32 = arith.constant 0 : i32
    %c0_i32_0 = arith.constant 0 : i32
    %c0_i32_1 = arith.constant 0 : i32
    return %c0_i32, %c0_i32_0 : i32, i32
  }
  func.func @transform_5(%arg0: i32) -> (i32, i32) {
    %c0_i32 = arith.constant 0 : i32
    %c0_i32_0 = arith.constant 0 : i32
    %c0_i32_1 = arith.constant 0 : i32
    return %c0_i32, %c0_i32_0 : i32, i32
  }
}

</mosaic_0001>

<bundles_post_ra>
// kernel: ssconv_forward.1
= control target key start
LH: loop header
LB: loop body
LE: loop exit
PB: predicated region body
PF: predicated region fallthrough
CT: control target
= control target key end

     0   :  { %v754_v0 = vmov 0   ;;  %v755_v2 = vmov 2   ;;  %v756_v4 = vmov 1   ;;  %v757_v5 = vmov 3   ;;  %s759_s6 = smov 2   ;;  %s760_s13 = smov 16   ;;  %s1249_s1 = inlined_call_operand.vmem [shape: f32[8,4], index: 1, kind: input, shape index: {}]   ;;  %s1250_s2 = inlined_call_operand.vmem [shape: f32[8,1], index: 2, kind: input, shape index: {}]   ;;  %s1251_s3 = inlined_call_operand.vmem [shape: f32[9,8,512], index: 3, kind: input, shape index: {}]   ;;  %s1252_s0 = inlined_call_operand.vmem [shape: f32[4,512], index: 0, kind: input, shape index: {}]   ;;  %s1253_s4 = inlined_call_operand.vmem [shape: f32[8,1], index: 4, kind: input, shape index: {}]   ;;  %s1254_s5 = inlined_call_operand.vmem [shape: f32[8,512], index: 5, kind: output, shape index: {}]  }
   0x1   :  { %747 = vset.pattern.permute.xlu0 %v754_v0  ;;  %v22_v1 = vld [vmem:[%s1249_s1] sm:$0xff]  ;;  %749 = vset.pattern.permute.xlu1 %v755_v2  ;;  %s758_s1 = smov 1   ;;  %v695_v7 = vld [vmem:[%s1251_s3 + $0x28] sm:$0xff]  ;;  %v697_v8 = vld [vmem:[%s1251_s3 + $0x38] sm:$0xff]  ;;  %s761_s20 = smov 17   ;;  %vm211_vm3 = vcmask 7168  }
   0x2   :  { %25 = vperm.xlu0 %747, %v22_v1   ;;  %75 = vperm.xlu1 %749, %v22_v1   ;;  %v122_v3 = vld [vmem:[%s1250_s2] sm:$0xff]  ;;  %v696_v9 = vld [vmem:[%s1251_s3 + $0x30] sm:$0xff]  ;;  %v699_v10 = vld [vmem:[%s1251_s3 + $0x48] sm:$0xff]  ;;  %s762_s2 = smov 18   ;;  %s763_s7 = smov 32   ;;  %vm270_vm5 = vcmask 15360  }
   0x3   :  { %751 = vset.pattern.permute.xlu2 %v754_v0  ;;  %v694_v6 = vld [vmem:[%s1251_s3 + $0x20] sm:$0xff]  ;;  %v700_v12 = vld [vmem:[%s1251_s3 + $0x50] sm:$0xff]  ;;  %v703_v13 = vld [vmem:[%s1251_s3 + $0x68] sm:$0xff]  ;;  %s764_s18 = smov 33   ;;  %vm329_vm6 = vcmask 130048   ;;  %vm162_vm7 = vcmask 138240  }
   0x4   :  { %125 = vperm.xlu2 %751, %v122_v3   ;;  %v698_v11 = vld [vmem:[%s1251_s3 + $0x40] sm:$0xff]  ;;  %v701_v14 = vld [vmem:[%s1251_s3 + $0x58] sm:$0xff]  ;;  %v704_v15 = vld [vmem:[%s1251_s3 + $0x70] sm:$0xff]  ;;  %vm446_vm8 = vcmask 146432   ;;  %vm148_vm9 = vcmask 277504   ;;  %vm564_vm10 = vcmask 269312  }
   0x5   :  { %v707_v16 = vld [vmem:[%s1251_s3 + $0x88] sm:$0xff]  ;;  %v702_v17 = vld [vmem:[%s1251_s3 + $0x60] sm:$0xff]  ;;  %v708_v18 = vld [vmem:[%s1251_s3 + $0x90] sm:$0xff]  ;;  %vm505_vm11 = vcmask 261120   ;;  %vm171_vm12 = vcmask 1047688   ;;  %s768_s17 = smov 127  }
   0x6   :  { %v711_v19 = vld [vmem:[%s1251_s3 + $0xa8] sm:$0xff]  ;;  %v705_v20 = vld [vmem:[%s1251_s3 + $0x78] sm:$0xff]  ;;  %v712_v21 = vld [vmem:[%s1251_s3 + $0xb0] sm:$0xff]  ;;  %s770_s19 = smov 112   ;;  %s771_s21 = smov 95   ;;  %vm240_vm13 = vcmask 1039360  }
   0x7   :  { %v714_v22 = vld [vmem:[%s1251_s3 + $0xc0] sm:$0xff]  ;;  %v715_v24 = vld [vmem:[%s1251_s3 + $0xc8] sm:$0xff]  ;;  %v717_v25 = vld [vmem:[%s1251_s3 + $0xd8] sm:$0xff]  ;;  %s772_s22 = smov 111   ;;  %s773_s23 = smov 110   ;;  %vm299_vm14 = vcmask 1031168  }
   0x8   :  { %v706_v23 = vld [vmem:[%s1251_s3 + $0x80] sm:$0xff]  ;;  %v709_v26 = vld [vmem:[%s1251_s3 + $0x98] sm:$0xff]  ;;  %v720_v29 = vld [vmem:[%s1251_s3 + $0xf0] sm:$0xff]  ;;  %vm358_vm15 = vcmask 916480  }
   0x9   :  { %v718_v27 = vld [vmem:[%s1251_s3 + $0xe0] sm:$0xff]  ;;  %v721_v30 = vld [vmem:[%s1251_s3 + $0xf8] sm:$0xff]  ;;  %v716_v32 = vld [vmem:[%s1251_s3 + $0xd0] sm:$0xff] }
   0xa   :  { %748 = vset.pattern.permute.xlu0 %v756_v4  ;;  %750 = vset.pattern.permute.xlu1 %v757_v5  ;;  %v710_v28 = vld [vmem:[%s1251_s3 + $0xa0] sm:$0xff]  ;;  %v713_v31 = vld [vmem:[%s1251_s3 + $0xb8] sm:$0xff]  ;;  %v723_v33 = vld [vmem:[%s1251_s3 + $0x108] sm:$0xff] }
   0xb   :  { %51 = vperm.xlu0 %748, %v22_v1   ;;  %99 = vperm.xlu1 %750, %v22_v1   ;;  %v724_v34 = vld [vmem:[%s1251_s3 + $0x110] sm:$0xff]  ;;  %v719_v35 = vld [vmem:[%s1251_s3 + $0xe8] sm:$0xff]  ;;  %v722_v36 = vld [vmem:[%s1251_s3 + $0x100] sm:$0xff] }
   0xc   :  { %205 = vrot.lane.b32.xlu2 %v695_v7, %s758_s1  ;;  %v20_v37 = vld [vmem:[%s1252_s0] sm:$0xff]  ;;  %v21_v38 = vld [vmem:[%s1252_s0 + $0x8] sm:$0xff]  ;;  %v725_v59 = vld [vmem:[%s1251_s3 + $0x118] sm:$0xff] }
   0xd   :  { %v30_v40 = vperm.slane %v20_v37, 0  ;;  %v31_v41 = vperm.slane %v20_v37, 4  ;;  %v32_v43 = vperm.slane %v21_v38, 0  ;;  %v33_v44 = vperm.slane %v21_v38, 4 }
   0xe   :  { %v78_v45 = vperm.slane %v20_v37, 2  ;;  %v79_v46 = vperm.slane %v20_v37, 6  ;;  %v54_v47 = vperm.slane %v20_v37, 1  ;;  %v55_v48 = vperm.slane %v20_v37, 5 }
   0xf   :  { %v56_v49 = vperm.slane %v21_v38, 1  ;;  %v57_v50 = vperm.slane %v21_v38, 5  ;;  %v81_v51 = vperm.slane %v21_v38, 6  ;;  %v102_v52 = vperm.slane %v20_v37, 3 }
  0x10   :  { %v103_v53 = vperm.slane %v20_v37, 7  ;;  %v105_v54 = vperm.slane %v21_v38, 7  ;;  %v38_v55 = vperm.slane %v30_v40, 0  ;;  %v39_v56 = vperm.slane %v31_v41, 0 }
  0x11   :  { %v80_v57 = vperm.slane %v21_v38, 2  ;;  %v104_v58 = vperm.slane %v21_v38, 3  ;;  %v40_v60 = vperm.slane %v32_v43, 0  ;;  %v41_v61 = vperm.slane %v33_v44, 0 }
  0x12   :  { %v86_v62 = vperm.slane %v78_v45, 2  ;;  %v87_v63 = vperm.slane %v79_v46, 2  ;;  %v63_v1 = vperm.slane %v55_v48, 1  ;;  %v64_v2 = vperm.slane %v56_v49, 1 }
  0x13   :  { %203 = vrot.lane.b32.xlu1 %v694_v6, %s758_s1  ;;  %753 = vset.pattern.permute.xlu0 %v754_v0  ;;  %v65_v3 = vperm.slane %v57_v50, 1  ;;  %v89_v4 = vperm.slane %v81_v51, 2  ;;  %v110_v5 = vperm.slane %v102_v52, 3  ;;  %v111_v6 = vperm.slane %v103_v53, 3 }
  0x14   :  { %752 = vset.pattern.permute.xlu1 %v754_v0  ;;  %207 = vrot.lane.b32.xlu0 %v696_v9, %s758_s1  ;;  %v62_v0 = vperm.slane %v54_v47, 1  ;;  %v113_v7 = vperm.slane %v105_v54, 3 }
  0x15   :  { %264 = vrot.lane.b32.xlu2 %v699_v10, %s759_s6  ;;  %v88_v10 = vperm.slane %v80_v57, 2 }
  0x1b   :  { %209 = vrot.lane.b32.xlu1 %v697_v8, %s758_s1  ;;  %s774_s1 = smov 94  }
  0x1c   :  { %266 = vrot.lane.b32.xlu0 %v700_v12, %s759_s6 }
  0x1d   :  { %323 = vrot.lane.b32.xlu2 %v703_v13, %s760_s13 }
  0x23   :  { %262 = vrot.lane.b32.xlu1 %v698_v11, %s759_s6  ;;  %v112_v11 = vperm.slane %v104_v58, 3 }
  0x24   :  { %325 = vrot.lane.b32.xlu0 %v704_v15, %s760_s13 }
  0x25   :  { %382 = vrot.lane.b32.xlu2 %v707_v16, %s761_s20 }
  0x2b   :  { %268 = vrot.lane.b32.xlu1 %v701_v14, %s759_s6  ;;  %s765_s6 = smov 34  }
  0x2c   :  { %384 = vrot.lane.b32.xlu0 %v708_v18, %s761_s20 }
  0x2d   :  { %440 = vrot.lane.b32.xlu2 %v711_v19, %s762_s2 }
  0x33   :  { %321 = vrot.lane.b32.xlu1 %v702_v17, %s760_s13 }
  0x34   :  { %442 = vrot.lane.b32.xlu0 %v712_v21, %s762_s2 }
  0x35   :  { %497 = vrot.lane.b32.xlu2 %v714_v22, %s763_s7 }
  0x3b   :  { %327 = vrot.lane.b32.xlu1 %v705_v20, %s760_s13 }
  0x3c   :  { %499 = vrot.lane.b32.xlu0 %v715_v24, %s763_s7 }
  0x3d   :  { %503 = vrot.lane.b32.xlu2 %v717_v25, %s763_s7 }
  0x43   :  { %380 = vrot.lane.b32.xlu1 %v706_v23, %s761_s20 }
  0x44   :  { %556 = vrot.lane.b32.xlu0 %v718_v27, %s764_s18 }
  0x45   :  { %560 = vrot.lane.b32.xlu2 %v720_v29, %s764_s18 }
  0x4b   :  { %386 = vrot.lane.b32.xlu1 %v709_v26, %s761_s20 }
  0x4c   :  { %562 = vrot.lane.b32.xlu0 %v721_v30, %s764_s18 }
  0x4d   :  { %617 = vrot.lane.b32.xlu2 %v723_v33, %s765_s6 }
  0x53   :  { %438 = vrot.lane.b32.xlu1 %v710_v28, %s762_s2 }
  0x54   :  { %619 = vrot.lane.b32.xlu0 %v724_v34, %s765_s6 }
  0x5b   :  { %444 = vrot.lane.b32.xlu1 %v713_v31, %s762_s2 }
  0x5e   :  { %v126_v22 = vpop.permute.xlu2 %125 }
  0x63   :  { %501 = vrot.lane.b32.xlu1 %v716_v32, %s763_s7 }
  0x66   :  { %v923_v45 = vpop.permute.xlu2 %205 }
  0x6b   :  { %558 = vrot.lane.b32.xlu1 %v719_v35, %s764_s18  ;;  %s769_s18 = smov 126  }
  0x6f   :  { %v937_v57 = vpop.permute.xlu2 %264 }
  0x73   :  { %615 = vrot.lane.b32.xlu1 %v722_v36, %s765_s6 }
  0x74   :  { %v26_v39 = vpop.permute.xlu0 %25  ;;  %v76_v42 = vpop.permute.xlu1 %75 }
  0x75   :  { %v42_v8 = vmul.f32 %v38_v55, %v26_v39  ;;  %v43_v9 = vmul.f32 %v39_v56, %v26_v39  ;;  %v44_v12 = vmul.f32 %v40_v60, %v26_v39  ;;  %v45_v13 = vmul.f32 %v41_v61, %v26_v39 }
  0x76   :  { %v90_v14 = vmul.f32 %v86_v62, %v76_v42  ;;  %v91_v15 = vmul.f32 %v87_v63, %v76_v42  ;;  %v93_v23 = vmul.f32 %v89_v4, %v76_v42  ;;  %v92_v31 = vmul.f32 %v88_v10, %v76_v42 }
  0x77   :  { %v949_v62 = vpop.permute.xlu2 %323 }
  0x7b   :  { %621 = vrot.lane.b32.xlu1 %v725_v59, %s765_s6 }
  0x7d   :  { %v52_v16 = vpop.permute.xlu0 %51  ;;  %v100_v17 = vpop.permute.xlu1 %99 }
  0x7e   :  { %v66_v18 = vmul.f32 %v62_v0, %v52_v16  ;;  %v67_v19 = vmul.f32 %v63_v1, %v52_v16  ;;  %v68_v20 = vmul.f32 %v64_v2, %v52_v16  ;;  %v69_v21 = vmul.f32 %v65_v3, %v52_v16 }
  0x7f   :  { %v114_v24 = vmul.f32 %v110_v5, %v100_v17  ;;  %v115_v25 = vmul.f32 %v111_v6, %v100_v17  ;;  %v117_v26 = vmul.f32 %v113_v7, %v100_v17  ;;  %v116_v35 = vmul.f32 %v112_v11, %v100_v17  ;;  %v383_v2 = vpop.permute.xlu2 %382 }
  0x80   :  { %v70_v27 = vadd.f32 %v66_v18, %v42_v8  ;;  %v71_v28 = vadd.f32 %v67_v19, %v43_v9  ;;  %v72_v29 = vadd.f32 %v68_v20, %v44_v12  ;;  %v73_v30 = vadd.f32 %v69_v21, %v45_v13 }
  0x82   :  { %v94_v32 = vadd.f32 %v90_v14, %v70_v27  ;;  %v95_v33 = vadd.f32 %v91_v15, %v71_v28  ;;  %v97_v34 = vadd.f32 %v93_v23, %v73_v30  ;;  %v96_v36 = vadd.f32 %v92_v31, %v72_v29 }
  0x83   :  { %v766_v15 = vmov 0.0  }
  0x84   :  { %v118_v37 = vadd.f32 %v114_v24, %v94_v32  ;;  %v119_v38 = vadd.f32 %v115_v25, %v95_v33  ;;  %v121_v39 = vadd.f32 %v117_v26, %v97_v34  ;;  %v120_v46 = vadd.f32 %v116_v35, %v96_v36  ;;  %144 = vst [vmem:[#allocation2] sm:$0xff] %v766_v15 }
  0x85   :  { %v921_v40 = vpop.permute.xlu1 %203  ;;  %149 = vst.msk [vmem:[#allocation2 + $0x20] sm:$0xff] %vm148_vm9, %v766_v15 }
  0x86   :  { %v128_v41 = vadd.f32 %v126_v22, %v118_v37  ;;  %v129_v43 = vadd.f32 %v126_v22, %v119_v38  ;;  %v131_v44 = vadd.f32 %v126_v22, %v121_v39  ;;  %v130_v51 = vadd.f32 %v126_v22, %v120_v46  ;;  %v930_v54 = vpop.permute.xlu0 %207 }
  0x87   :  { %v935_v56 = vsel %vm211_vm3, %v923_v45, %v930_v54  ;;  %v441_v7 = vpop.permute.xlu2 %440 }
  0x88   :  { %vm135_vm0 = vcmp.gt.f32.partialorder %v131_v44, 0.0  ;;  %v139_v47 = vmul.f32 0.01, %v131_v44  ;;  %vm133_vm1 = vcmp.gt.f32.partialorder %v129_v43, 0.0  ;;  %v137_v42 = vmul.f32 0.01, %v129_v43 }
  0x89   :  { %vm132_vm2 = vcmp.gt.f32.partialorder %v128_v41, 0.0  ;;  %v136_v48 = vmul.f32 0.01, %v128_v41  ;;  %v138_v55 = vmul.f32 0.01, %v130_v51  ;;  %vm134_vm4 = vcmp.gt.f32.partialorder %v130_v51, 0.0 }
  0x8a   :  { %v143_v49 = vsel %vm135_vm0, %v131_v44, %v139_v47  ;;  %v141_v50 = vsel %vm133_vm1, %v129_v43, %v137_v42  ;;  %vm416_vm0 = vcmask 908288   ;;  %vm475_vm1 = vcmask 900096  }
  0x8b   :  { %160 = vrot.lane.b32.xlu0 %v143_v49, %s761_s20  ;;  %156 = vrot.lane.b32.xlu1 %v141_v50, %s761_s20  ;;  %v140_v52 = vsel %vm132_vm2, %v128_v41, %v136_v48  ;;  %v142_v58 = vsel %vm134_vm4, %v130_v51, %v138_v55  ;;  %vm534_vm2 = vcmask 785408   ;;  %vm651_vm4 = vcmask 769024  }
  0x8c   :  { %154 = vrot.lane.b32.xlu2 %v140_v52, %s761_s20 }
  0x8d   :  { %v928_v53 = vpop.permute.xlu1 %209 }
  0x8e   :  { %v942_v60 = vpop.permute.xlu0 %266 }
  0x8f   :  { %v947_v61 = vsel %vm270_vm5, %v937_v57, %v942_v60  ;;  %v498_v12 = vpop.permute.xlu2 %497 }
  0x94   :  { %158 = vrot.lane.b32.xlu2 %v142_v58, %s761_s20  ;;  %s767_s20 = smov 96  }
  0x95   :  { %v940_v59 = vpop.permute.xlu1 %262 }
  0x96   :  { %v953_v0 = vpop.permute.xlu0 %325 }
  0x97   :  { %v958_v1 = vsel %vm329_vm6, %v949_v62, %v953_v0  ;;  %v974_v16 = vpop.permute.xlu2 %503 }
  0x9d   :  { %v951_v63 = vpop.permute.xlu1 %268 }
  0x9e   :  { %v385_v4 = vpop.permute.xlu0 %384 }
  0x9f   :  { %v961_v5 = vsel %vm162_vm7, %v383_v2, %v385_v4  ;;  %v561_v20 = vpop.permute.xlu2 %560 }
  0xa5   :  { %v322_v3 = vpop.permute.xlu1 %321 }
  0xa6   :  { %v443_v8 = vpop.permute.xlu0 %442  ;;  %v330_v51 = vsel %vm329_vm6, %v322_v3, %v949_v62 }
  0xa7   :  { %v966_v9 = vsel %vm446_vm8, %v441_v7, %v443_v8  ;;  %v618_v26 = vpop.permute.xlu2 %617 }
  0xad   :  { %v963_v6 = vpop.permute.xlu1 %327 }
  0xae   :  { %v500_v13 = vpop.permute.xlu0 %499 }
  0xaf   :  { %v506_v55 = vsel %vm505_vm11, %v498_v12, %v500_v13 }
  0xb5   :  { %v968_v10 = vpop.permute.xlu1 %380 }
  0xb6   :  { %v388_v11 = vsel %vm162_vm7, %v968_v10, %v383_v2  ;;  %v976_v17 = vpop.permute.xlu0 %556 }
  0xbd   :  { %v972_v14 = vpop.permute.xlu1 %386 }
  0xbe   :  { %v563_v23 = vpop.permute.xlu0 %562  ;;  %v390_v52 = vsel %vm162_vm7, %v385_v4, %v972_v14 }
  0xbf   :  { %v567_v24 = vsel %vm564_vm10, %v561_v20, %v563_v23 }
  0xc5   :  { %v978_v18 = vpop.permute.xlu1 %438 }
  0xc6   :  { %v447_v19 = vsel %vm446_vm8, %v978_v18, %v441_v7  ;;  %v620_v28 = vpop.permute.xlu0 %619 }
  0xc7   :  { %v624_v29 = vsel %vm148_vm9, %v618_v26, %v620_v28 }
  0xcd   :  { %v983_v21 = vpop.permute.xlu1 %444 }
  0xce   :  { %v449_v22 = vsel %vm446_vm8, %v443_v8, %v983_v21 }
  0xd5   :  { %v987_v25 = vpop.permute.xlu1 %501 }
  0xd6   :  { %v507_v27 = vsel %vm505_vm11, %v500_v13, %v987_v25 }
  0xdd   :  { %v559_v30 = vpop.permute.xlu1 %558 }
  0xde   :  { %v566_v31 = vsel %vm564_vm10, %v559_v30, %v561_v20  ;;  %v993_v32 = vsel %vm564_vm10, %v976_v17, %v559_v30 }
  0xe5   :  { %v995_v33 = vpop.permute.xlu1 %615 }
  0xe6   :  { %v155_v34 = vpop.permute.xlu2 %154  ;;  %v623_v35 = vsel %vm148_vm9, %v995_v33, %v618_v26 }
  0xe7   :  { %172 = vst.msk [vmem:[#allocation2] sm:$0xff] %vm171_vm12, %v155_v34 }
  0xed   :  { %v622_v36 = vpop.permute.xlu1 %621 }
  0xee   :  { %v999_v37 = vld [vmem:[#allocation2] sm:$0xff]  ;;  %v625_v38 = vsel %vm148_vm9, %v620_v28, %v622_v36  ;;  %v159_v44 = vpop.permute.xlu2 %158 }
  0xef   :  { %v514_v39 = vmul.f32 %v498_v12, %v999_v37  ;;  %v220_v41 = vmul.f32 %v921_v40, %v999_v37  ;;  %v279_v43 = vmul.f32 %v940_v59, %v999_v37  ;;  %v338_v50 = vmul.f32 %v322_v3, %v999_v37 }
  0xf0   :  { %v396_v28 = vmul.f32 %v968_v10, %v999_v37 }
  0xf1   :  { %524 = vrot.lane.b32.xlu1 %v514_v39, %s767_s20  ;;  %230 = vrot.lane.b32.xlu2 %v220_v41, %s768_s17 }
  0xf9   :  { %289 = vrot.lane.b32.xlu2 %v279_v43, %s769_s18 }
  0xfd   :  { %v161_v46 = vpop.permute.xlu0 %160  ;;  %v157_v47 = vpop.permute.xlu1 %156 }
  0xfe   :  { %v1011_v42 = vsel %vm162_vm7, %v159_v44, %v161_v46  ;;  %176 = vst.msk [vmem:[#allocation2 + $0x20] sm:$0xff] %vm162_vm7, %v161_v46  ;;  %v1015_v48 = vsel %vm162_vm7, %v155_v34, %v157_v47  ;;  %v1018_v49 = vsel %vm162_vm7, %v157_v47, %v159_v44  ;;  %v631_v34 = vmul.f32 %v995_v33, %v999_v37  ;;  %v184_v46 = vld [vmem:[%s1251_s3 + $0x18] sm:$0xff] }
  0xff   :  { %v1028_v58 = vmul.f32 %v390_v52, %v1011_v42  ;;  %v1031_v2 = vmul.f32 %v330_v51, %v1015_v48  ;;  %v1034_v7 = vmul.f32 %v449_v22, %v1011_v42  ;;  %v1037_v8 = vmul.f32 %v624_v29, %v1018_v49 }
 0x100   :  { %v1040_v62 = vmul.f32 %v388_v11, %v1015_v48  ;;  %v1043_v3 = vmul.f32 %v506_v55, %v1015_v48  ;;  %v1046_v4 = vmul.f32 %v447_v19, %v1015_v48  ;;  %v1049_v12 = vmul.f32 %v566_v31, %v1018_v49 }
 0x101   :  { %348 = vrot.lane.b32.xlu2 %v338_v50, %s770_s19  ;;  %v1052_v13 = vmul.f32 %v625_v38, %v1011_v42  ;;  %v1055_v15 = vmul.f32 %v507_v27, %v1018_v49  ;;  %v1058_v20 = vmul.f32 %v567_v24, %v1011_v42  ;;  %v1061_v22 = vmul.f32 %v623_v35, %v1015_v48 }
 0x102   :  { %v222_v27 = vmul.f32 %v935_v56, %v1018_v49  ;;  %v281_v30 = vmul.f32 %v947_v61, %v1018_v49  ;;  %v214_v61 = vsel %vm211_vm3, %v930_v54, %v928_v53  ;;  %v273_v33 = vsel %vm270_vm5, %v942_v60, %v951_v63 }
 0x103   :  { %v457_v54 = vmul.f32 %v966_v9, %v1018_v49  ;;  %v212_v60 = vsel %vm211_vm3, %v921_v40, %v923_v45  ;;  %v271_v40 = vsel %vm270_vm5, %v940_v59, %v937_v57  ;;  %v664_v59 = vld [vmem:[%s1253_s4] sm:$0xff]  ;;  %v188_v51 = vmul.f32 %v184_v46, %v1011_v42 }
 0x104   :  { %v221_v9 = vmul.f32 %v212_v60, %v1015_v48  ;;  %v280_v45 = vmul.f32 %v271_v40, %v1015_v48  ;;  %vm593_vm3 = vcmask 777216  }
 0x105   :  { %v193_v11 = vld [vmem:[#allocation2 + $0x20] sm:$0xff] }
 0x106   :  { %v224_v26 = vmul.f32 %v928_v53, %v193_v11  ;;  %v577_v19 = vmul.f32 %v563_v23, %v193_v11  ;;  %v1066_v29 = vmul.f32 %v622_v36, %v193_v11  ;;  %v283_v24 = vmul.f32 %v951_v63, %v193_v11 }
 0x107   :  { %v455_v23 = vmul.f32 %v978_v18, %v999_v37  ;;  %v342_v10 = vmul.f32 %v963_v6, %v193_v11  ;;  %v518_v31 = vmul.f32 %v974_v16, %v193_v11  ;;  %v400_v56 = vmul.f32 %v972_v14, %v193_v11 }
 0x108   :  { %238 = vrot.lane.b32.xlu0 %v224_v26, %s768_s17  ;;  %591 = vrot.lane.b32.xlu1 %v577_v19, %s771_s21  ;;  %v340_v18 = vmul.f32 %v958_v1, %v1018_v49  ;;  %v459_v35 = vmul.f32 %v983_v21, %v193_v11  ;;  %v398_v14 = vmul.f32 %v961_v5, %v1018_v49 }
 0x109   :  { %406 = vrot.lane.b32.xlu2 %v396_v28, %s772_s22  ;;  %v223_v1 = vmul.f32 %v214_v61, %v1011_v42  ;;  %v573_v53 = vmul.f32 %v976_v17, %v999_v37  ;;  %v282_v5 = vmul.f32 %v273_v33, %v1011_v42  ;;  %v508_v21 = vsel %vm505_vm11, %v987_v25, %v974_v16  ;;  %v181_v61 = vld [vmem:[%s1251_s3] sm:$0xff] }
 0x10a   :  { %v332_v63 = vsel %vm329_vm6, %v953_v0, %v963_v6  ;;  %v517_v17 = vmul.f32 %v508_v21, %v1011_v42  ;;  %v574_v0 = vmul.f32 %v993_v32, %v1015_v48 }
 0x10b   :  { %v341_v36 = vmul.f32 %v332_v63, %v1011_v42 }
 0x110   :  { %297 = vrot.lane.b32.xlu0 %v283_v24, %s769_s18  ;;  %234 = vrot.lane.b32.xlu1 %v222_v27, %s768_s17 }
 0x111   :  { %465 = vrot.lane.b32.xlu2 %v455_v23, %s773_s23 }
 0x118   :  { %356 = vrot.lane.b32.xlu0 %v342_v10, %s770_s19  ;;  %293 = vrot.lane.b32.xlu1 %v281_v30, %s769_s18 }
 0x119   :  { %532 = vrot.lane.b32.xlu2 %v518_v31, %s767_s20 }
 0x120   :  { %414 = vrot.lane.b32.xlu0 %v400_v56, %s772_s22  ;;  %352 = vrot.lane.b32.xlu1 %v340_v18, %s770_s19 }
 0x121   :  { %641 = vrot.lane.b32.xlu2 %v631_v34, %s774_s1 }
 0x128   :  { %473 = vrot.lane.b32.xlu0 %v459_v35, %s773_s23  ;;  %410 = vrot.lane.b32.xlu1 %v398_v14, %s772_s22  ;;  %v185_v14 = vmul.f32 %v181_v61, %v999_v37 }
 0x129   :  { %236 = vrot.lane.b32.xlu2 %v223_v1, %s768_s17 }
 0x130   :  { %583 = vrot.lane.b32.xlu0 %v573_v53, %s771_s21  ;;  %469 = vrot.lane.b32.xlu1 %v457_v54, %s773_s23 }
 0x131   :  { %295 = vrot.lane.b32.xlu2 %v282_v5, %s769_s18 }
 0x138   :  { %232 = vrot.lane.b32.xlu0 %v221_v9, %s768_s17  ;;  %530 = vrot.lane.b32.xlu1 %v517_v17, %s767_s20 }
 0x139   :  { %354 = vrot.lane.b32.xlu2 %v341_v36, %s770_s19  ;;  %v183_v36 = vld [vmem:[%s1251_s3 + $0x10] sm:$0xff] }
 0x140   :  { %291 = vrot.lane.b32.xlu0 %v280_v45, %s769_s18  ;;  %585 = vrot.lane.b32.xlu1 %v574_v0, %s771_s21 }
 0x141   :  { %412 = vrot.lane.b32.xlu2 %v1028_v58, %s772_s22 }
 0x148   :  { %350 = vrot.lane.b32.xlu0 %v1031_v2, %s770_s19  ;;  %645 = vrot.lane.b32.xlu1 %v1037_v8, %s774_s1 }
 0x149   :  { %471 = vrot.lane.b32.xlu2 %v1034_v7, %s773_s23 }
 0x14b   :  { %v231_v57 = vpop.permute.xlu2 %230 }
 0x150   :  { %408 = vrot.lane.b32.xlu0 %v1040_v62, %s772_s22  ;;  %667 = vperm.xlu1 %752, %v664_v59   ;;  %v187_v59 = vmul.f32 %v183_v36, %v1018_v49 }
 0x151   :  { %526 = vrot.lane.b32.xlu2 %v1043_v3, %s767_s20 }
 0x153   :  { %v290_v6 = vpop.permute.xlu2 %289 }
 0x158   :  { %467 = vrot.lane.b32.xlu0 %v1046_v4, %s773_s23 }
 0x159   :  { %587 = vrot.lane.b32.xlu2 %v1049_v12, %s771_s21 }
 0x15b   :  { %v349_v16 = vpop.permute.xlu2 %348 }
 0x160   :  { %528 = vrot.lane.b32.xlu0 %v1055_v15, %s767_s20 }
 0x161   :  { %647 = vrot.lane.b32.xlu2 %v1052_v13, %s774_s1 }
 0x163   :  { %v407_v25 = vpop.permute.xlu2 %406  ;;  %v1167_v38 = vpop.permute.xlu1 %524 }
 0x168   :  { %589 = vrot.lane.b32.xlu0 %v1058_v20, %s771_s21 }
 0x16b   :  { %v1163_v32 = vpop.permute.xlu2 %465 }
 0x170   :  { %643 = vrot.lane.b32.xlu0 %v1061_v22, %s774_s1 }
 0x173   :  { %v533_v39 = vpop.permute.xlu2 %532 }
 0x178   :  { %649 = vrot.lane.b32.xlu0 %v1066_v29, %s774_s1 }
 0x17a   :  { %v239_v41 = vpop.permute.xlu0 %238  ;;  %v1171_v43 = vpop.permute.xlu1 %591 }
 0x17b   :  { %v1173_v44 = vpop.permute.xlu2 %641 }
 0x182   :  { %v298_v47 = vpop.permute.xlu0 %297  ;;  %v1178_v50 = vpop.permute.xlu1 %234 }
 0x183   :  { %v237_v52 = vpop.permute.xlu2 %236 }
 0x184   :  { %v244_v55 = vsel %vm240_vm13, %v237_v52, %v239_v41  ;;  %v243_v0 = vsel %vm240_vm13, %v1178_v50, %v237_v52 }
 0x185   :  { %v252_v58 = vadd.f32 %v244_v55, %v188_v51 }
 0x18a   :  { %v357_v2 = vpop.permute.xlu0 %356  ;;  %v294_v7 = vpop.permute.xlu1 %293 }
 0x18b   :  { %v296_v8 = vpop.permute.xlu2 %295 }
 0x18c   :  { %v303_v62 = vsel %vm299_vm14, %v296_v8, %v298_v47 }
 0x18d   :  { %v311_v3 = vadd.f32 %v303_v62, %v252_v58 }
 0x192   :  { %v415_v4 = vpop.permute.xlu0 %414  ;;  %v353_v12 = vpop.permute.xlu1 %352 }
 0x193   :  { %v355_v13 = vpop.permute.xlu2 %354 }
 0x194   :  { %v362_v15 = vsel %vm358_vm15, %v355_v13, %v357_v2 }
 0x195   :  { %v370_v20 = vadd.f32 %v362_v15, %v311_v3 }
 0x19a   :  { %v474_v42 = vpop.permute.xlu0 %473  ;;  %v411_v11 = vpop.permute.xlu1 %410 }
 0x19b   :  { %v413_v22 = vpop.permute.xlu2 %412 }
 0x19c   :  { %v420_v26 = vsel %vm416_vm0, %v413_v22, %v415_v4  ;;  %v419_v49 = vsel %vm416_vm0, %v411_v11, %v413_v22 }
 0x19d   :  { %v428_v19 = vadd.f32 %v420_v26, %v370_v20 }
 0x1a2   :  { %v1185_v28 = vpop.permute.xlu0 %583  ;;  %v470_v29 = vpop.permute.xlu1 %469 }
 0x1a3   :  { %v472_v24 = vpop.permute.xlu2 %471 }
 0x1a4   :  { %v479_v27 = vsel %vm475_vm1, %v472_v24, %v474_v42  ;;  %v478_v2 = vsel %vm475_vm1, %v470_v29, %v472_v24 }
 0x1a5   :  { %v487_v23 = vadd.f32 %v479_v27, %v428_v19 }
 0x1aa   :  { %v233_v10 = vpop.permute.xlu0 %232  ;;  %v531_v30 = vpop.permute.xlu1 %530 }
 0x1ab   :  { %v538_v31 = vsel %vm534_vm2, %v531_v30, %v533_v39  ;;  %v241_v35 = vsel %vm240_vm13, %v231_v57, %v233_v10  ;;  %v527_v5 = vpop.permute.xlu2 %526  ;;  %v251_v39 = vadd.f32 %v243_v0, %v187_v59  ;;  %v242_v46 = vsel %vm240_vm13, %v233_v10, %v1178_v50 }
 0x1ac   :  { %v1189_v56 = vadd.f32 %v538_v31, %v487_v23  ;;  %v249_v53 = vadd.f32 %v241_v35, %v185_v14  ;;  %v535_v57 = vsel %vm534_vm2, %v1167_v38, %v527_v5 }
 0x1b2   :  { %v292_v18 = vpop.permute.xlu0 %291  ;;  %v586_v40 = vpop.permute.xlu1 %585 }
 0x1b3   :  { %v300_v33 = vsel %vm299_vm14, %v290_v6, %v292_v18  ;;  %v588_v41 = vpop.permute.xlu2 %587  ;;  %v301_v52 = vsel %vm299_vm14, %v292_v18, %v294_v7 }
 0x1b4   :  { %v308_v21 = vadd.f32 %v300_v33, %v249_v53  ;;  %v595_v18 = vsel %vm593_vm3, %v586_v40, %v588_v41 }
 0x1ba   :  { %v351_v34 = vpop.permute.xlu0 %350  ;;  %v646_v62 = vpop.permute.xlu1 %645 }
 0x1bb   :  { %v359_v54 = vsel %vm358_vm15, %v349_v16, %v351_v34  ;;  %v302_v16 = vsel %vm299_vm14, %v294_v7, %v296_v8  ;;  %v360_v8 = vsel %vm358_vm15, %v351_v34, %v353_v12  ;;  %v648_v7 = vpop.permute.xlu2 %647 }
 0x1bc   :  { %v367_v63 = vadd.f32 %v359_v54, %v308_v21  ;;  %v310_v47 = vadd.f32 %v302_v16, %v251_v39 }
 0x1c2   :  { %v409_v1 = vpop.permute.xlu0 %408  ;;  %v668_v23 = vpop.permute.xlu1 %667 }
 0x1c3   :  { %v417_v60 = vsel %vm416_vm0, %v407_v25, %v409_v1  ;;  %v182_v25 = vld [vmem:[%s1251_s3 + $0x8] sm:$0xff] }
 0x1c4   :  { %v425_v9 = vadd.f32 %v417_v60, %v367_v63  ;;  %v186_v51 = vmul.f32 %v182_v25, %v1015_v48 }
 0x1c6   :  { %v250_v58 = vadd.f32 %v242_v46, %v186_v51 }
 0x1c8   :  { %v309_v4 = vadd.f32 %v301_v52, %v250_v58 }
 0x1ca   :  { %v468_v17 = vpop.permute.xlu0 %467  ;;  %v368_v48 = vadd.f32 %v360_v8, %v309_v4 }
 0x1cb   :  { %v476_v37 = vsel %vm475_vm1, %v1163_v32, %v468_v17  ;;  %v361_v32 = vsel %vm358_vm15, %v353_v12, %v355_v13  ;;  %v418_v13 = vsel %vm416_vm0, %v409_v1, %v411_v11  ;;  %v477_v20 = vsel %vm475_vm1, %v468_v17, %v470_v29 }
 0x1cc   :  { %v484_v45 = vadd.f32 %v476_v37, %v425_v9  ;;  %v369_v55 = vadd.f32 %v361_v32, %v310_v47  ;;  %v426_v42 = vadd.f32 %v418_v13, %v368_v48  ;;  %v654_v11 = vsel %vm651_vm4, %v646_v62, %v648_v7 }
 0x1cd   :  { %v594_v29 = vsel %vm593_vm3, %v1185_v28, %v586_v40 }
 0x1ce   :  { %v543_v6 = vadd.f32 %v535_v57, %v484_v45  ;;  %v427_v3 = vadd.f32 %v419_v49, %v369_v55  ;;  %v485_v24 = vadd.f32 %v477_v20, %v426_v42 }
 0x1d0   :  { %v486_v15 = vadd.f32 %v478_v2, %v427_v3  ;;  %v602_v35 = vadd.f32 %v594_v29, %v543_v6 }
 0x1d2   :  { %v529_v38 = vpop.permute.xlu0 %528 }
 0x1d3   :  { %v537_v50 = vsel %vm534_vm2, %v529_v38, %v531_v30  ;;  %v536_v19 = vsel %vm534_vm2, %v527_v5, %v529_v38 }
 0x1d4   :  { %v545_v22 = vadd.f32 %v537_v50, %v486_v15  ;;  %v544_v10 = vadd.f32 %v536_v19, %v485_v24 }
 0x1d6   :  { %v603_v14 = vadd.f32 %v595_v18, %v544_v10 }
 0x1da   :  { %v590_v26 = vpop.permute.xlu0 %589 }
 0x1db   :  { %v596_v12 = vsel %vm593_vm3, %v588_v41, %v590_v26  ;;  %v597_v60 = vsel %vm593_vm3, %v590_v26, %v1171_v43 }
 0x1dc   :  { %v604_v27 = vadd.f32 %v596_v12, %v545_v22 }
 0x1de   :  { %v662_v30 = vadd.f32 %v654_v11, %v604_v27 }
 0x1e0   :  { %v672_v31 = vadd.f32 %v668_v23, %v662_v30 }
 0x1e2   :  { %vm676_vm5 = vcmp.gt.f32.partialorder %v672_v31, 0.0  ;;  %v680_v34 = vmul.f32 0.01, %v672_v31  ;;  %v644_v61 = vpop.permute.xlu0 %643 }
 0x1e3   :  { %v652_v1 = vsel %vm651_vm4, %v1173_v44, %v644_v61  ;;  %v653_v33 = vsel %vm651_vm4, %v644_v61, %v646_v62  ;;  %v605_v44 = vadd.f32 %v597_v60, %v1189_v56 }
 0x1e4   :  { %v684_v53 = vsel %vm676_vm5, %v672_v31, %v680_v34  ;;  %v660_v54 = vadd.f32 %v652_v1, %v602_v35  ;;  %v661_v5 = vadd.f32 %v653_v33, %v603_v14 }
 0x1e5   :  { %688 = vst [vmem:[%s1254_s5 + $0x10] sm:$0xff] %v684_v53 }
 0x1e6   :  { %v670_v28 = vadd.f32 %v668_v23, %v660_v54  ;;  %v671_v21 = vadd.f32 %v668_v23, %v661_v5 }
 0x1e8   :  { %vm674_vm6 = vcmp.gt.f32.partialorder %v670_v28, 0.0  ;;  %vm675_vm7 = vcmp.gt.f32.partialorder %v671_v21, 0.0  ;;  %v678_v63 = vmul.f32 0.01, %v670_v28  ;;  %v679_v9 = vmul.f32 0.01, %v671_v21 }
 0x1ea   :  { %v682_v17 = vsel %vm674_vm6, %v670_v28, %v678_v63  ;;  %v683_v36 = vsel %vm675_vm7, %v671_v21, %v679_v9  ;;  %v650_v40 = vpop.permute.xlu0 %649 }
 0x1eb   :  { %686 = vst [vmem:[%s1254_s5] sm:$0xff] %v682_v17  ;;  %v655_v37 = vsel %vm651_vm4, %v648_v7, %v650_v40 }
 0x1ec   :  { %687 = vst [vmem:[%s1254_s5 + $0x8] sm:$0xff] %v683_v36  ;;  %v663_v43 = vadd.f32 %v655_v37, %v605_v44 }
 0x1ee   :  { %v673_v45 = vadd.f32 %v668_v23, %v663_v43 }
 0x1f0   :  { %vm677_vm8 = vcmp.gt.f32.partialorder %v673_v45, 0.0  ;;  %v681_v0 = vmul.f32 0.01, %v673_v45 }
 0x1f2   :  { %v685_v57 = vsel %vm677_vm8, %v673_v45, %v681_v0 }
 0x1f3   :  { %689 = vst [vmem:[%s1254_s5 + $0x18] sm:$0xff] %v685_v57 }

</bundles_post_ra>
